<compile_context>
chip_gen: v7x
topology: tpu7x:2x2x1
jax: 0.10.0
libtpu: 0.0.40
codegen_flags: <defaults>
</compile_context>

<pallas_src>
import functools

import jax
import jax.numpy as jnp
from jax.experimental import pallas as pl
from jax.experimental.pallas import tpu as pltpu

D_IN, D_H1, D_H2, D_OUT = 32, 64, 32, 10
D_OUT_PAD = 64                 # pad layer-3 width so fea(64)+probs(64) = 128 lanes
SLAB_W = D_H1 + D_OUT_PAD      # 128 -> unmasked vst on the output slab
NEG_BIG = -1e30                # pad-lane logit bias; MUST stay f32 (exp -> exact 0)


# ----------------------------------------------------------------------------
# Kernel: whole MLP hot path for one (TB, 32) batch tile. Weights/biases are
# VMEM-resident (constant index_map). Emits a single lane-dense (TB, 128) bf16
# slab: lanes [0,64) = fea (first Linear, pre-activation), lanes [64,128) =
# softmax probabilities (only the first 10 of those lanes are meaningful).
# ----------------------------------------------------------------------------
def _classifier_kernel(x_ref, w1_ref, b1_ref, w2_ref, b2_ref, w3_ref, b3_ref,
                       slab_ref):
    # x streams in as f32; cast to bf16 on the VPU (mem-bound kernel -> VPU slack).
    x = x_ref[...].astype(jnp.bfloat16)                       # (TB, 32)

    # layer 1: fc(32->64); this pre-activation is also `fea` (f32 accumulate)
    fea = jnp.dot(x, w1_ref[...], preferred_element_type=jnp.float32) + b1_ref[...]

    # relu; dropout(p=0.5) is eval-mode identity
    h = jnp.maximum(fea, 0.0).astype(jnp.bfloat16)

    # layer 2: fc(64->32) + relu
    h = jnp.dot(h, w2_ref[...], preferred_element_type=jnp.float32) + b2_ref[...]
    h = jnp.maximum(h, 0.0).astype(jnp.bfloat16)

    # gradient reversal: identity in forward
    # layer 3: fc(32->10, zero-padded to 64 lanes) + softmax(dim=1). Pad lanes
    # carry a -1e30 f32 bias so exp(pad - m) == 0 and the row sum is unaffected.
    logits = jnp.dot(h, w3_ref[...], preferred_element_type=jnp.float32) + b3_ref[...]
    m = jnp.max(logits, axis=1, keepdims=True)
    e = jnp.exp(logits - m)
    inv = pl.reciprocal(jnp.sum(e, axis=1, keepdims=True), approx=True)
    probs = e * inv

    # Single lane-dense 128-wide store in bf16 (halves the dominant HBM stream).
    slab_ref[...] = jnp.concatenate([fea, probs], axis=1).astype(slab_ref.dtype)


def _round_up(n, m):
    return (n + m - 1) // m * m


def pack_params(params):
    """One-time parameter packing for the kernel: transpose (out,in)->(in,out),
    bf16-cast weights, pad layer 3 to 64 output lanes with a -1e30 f32 bias on
    the pad lanes. Call once; reuse the result for every forward call."""
    w1, b1, w2, b2, w3, b3 = params
    cdt = jnp.bfloat16
    w1t = jnp.asarray(w1).T.astype(cdt)
    w2t = jnp.asarray(w2).T.astype(cdt)
    w3t = jnp.pad(jnp.asarray(w3).T.astype(cdt), ((0, 0), (0, D_OUT_PAD - D_OUT)))
    b1r = jnp.asarray(b1).reshape(1, -1).astype(jnp.float32)
    b2r = jnp.asarray(b2).reshape(1, -1).astype(jnp.float32)
    b3r = jnp.pad(jnp.asarray(b3).reshape(1, -1).astype(jnp.float32),
                  ((0, 0), (0, D_OUT_PAD - D_OUT)), constant_values=NEG_BIG)
    return (w1t, b1r, w2t, b2r, w3t, b3r)


def _pick_tile(batch, tb):
    """Row tile (multiple of 16, <= 2048) and padded batch such that the grid
    has an even number of steps >= 2 (both v7x TensorCores get work)."""
    if tb is None:
        tb = _round_up(pl.cdiv(batch, 8), 16)     # aim for ~8 grid steps
    tb = max(16, min(_round_up(int(tb), 16), 2048))
    n_steps = pl.cdiv(batch, tb)
    if n_steps < 2:
        n_steps = 2
    elif n_steps % 2:
        n_steps += 1
    return tb, n_steps * tb


@functools.partial(jax.jit, static_argnames=("tb",))
def classifier_forward_padded(x, packed_params, tb=None):
    """Hot path. Returns the padded (b_pad, 128) bf16 slab:
    lanes [0,64) = fea, lanes [64,64+10) = softmax probs, remaining lanes = 0."""
    w1t, b1r, w2t, b2r, w3t, b3r = packed_params
    B = x.shape[0]
    assert x.shape[1] == D_IN

    tb_, b_pad = _pick_tile(B, tb)

    xq = x.astype(jnp.float32)
    if b_pad != B:
        xq = jnp.pad(xq, ((0, b_pad - B), (0, 0)))

    grid = (b_pad // tb_,)

    def row_spec(d):
        return pl.BlockSpec((tb_, d), lambda i: (i, 0))

    def const_spec(shape):
        return pl.BlockSpec(shape, lambda i: (0, 0))

    flops = 2 * b_pad * (D_IN * D_H1 + D_H1 * D_H2 + D_H2 * D_OUT_PAD)
    bytes_accessed = (b_pad * D_IN * 4                       # x (f32)
                      + b_pad * SLAB_W * 2                   # output slab (bf16)
                      + (w1t.size + w2t.size + w3t.size) * 2
                      + (b1r.size + b2r.size + b3r.size) * 4)
    cost = pl.CostEstimate(flops=flops,
                           transcendentals=b_pad * D_OUT_PAD,
                           bytes_accessed=bytes_accessed)

    slab = pl.pallas_call(
        _classifier_kernel,
        out_shape=jax.ShapeDtypeStruct((b_pad, SLAB_W), jnp.bfloat16),
        grid=grid,
        in_specs=[
            row_spec(D_IN),
            const_spec((D_IN, D_H1)), const_spec((1, D_H1)),
            const_spec((D_H1, D_H2)), const_spec((1, D_H2)),
            const_spec((D_H2, D_OUT_PAD)), const_spec((1, D_OUT_PAD)),
        ],
        out_specs=row_spec(SLAB_W),
        compiler_params=pltpu.CompilerParams(
            dimension_semantics=("parallel",)),
        cost_estimate=cost,
    )(xq, w1t, b1r, w2t, b2r, w3t, b3r)
    return slab


def classifier_forward(x, packed_params, tb=None):
    """Matches the PyTorch module's forward: returns (softmax_out (B,10), fea (B,64)).
    NOTE: the slicing below is one extra HBM pass over the slab; latency-critical
    consumers should call classifier_forward_padded() and slice lazily themselves."""
    slab = classifier_forward_padded(x, packed_params, tb=tb)
    B = x.shape[0]
    return slab[:B, D_H1:D_H1 + D_OUT], slab[:B, :D_H1]


# ----------------------------------------------------------------------------
# Deterministic parameter init (PyTorch nn.Linear-style uniform(-k, k), k=1/sqrt(fan_in))
# ----------------------------------------------------------------------------
def init_params(key, d_in=D_IN, d_h1=D_H1, d_h2=D_H2, d_out=D_OUT):
    ks = jax.random.split(key, 6)

    def lin(kw, kb, fan_in, fan_out):
        bound = 1.0 / jnp.sqrt(fan_in)
        w = jax.random.uniform(kw, (fan_out, fan_in), jnp.float32, -bound, bound)
        b = jax.random.uniform(kb, (fan_out,), jnp.float32, -bound, bound)
        return w, b

    w1, b1 = lin(ks[0], ks[1], d_in, d_h1)
    w2, b2 = lin(ks[2], ks[3], d_h1, d_h2)
    w3, b3 = lin(ks[4], ks[5], d_h2, d_out)
    return (w1, b1, w2, b2, w3, b3)


def reference_forward(x, params):
    w1, b1, w2, b2, w3, b3 = params
    fea = x @ w1.T + b1
    h = jnp.maximum(fea, 0.0)
    h = jnp.maximum(h @ w2.T + b2, 0.0)
    logits = h @ w3.T + b3
    out = jax.nn.softmax(logits, axis=1)
    return out, fea


# TODO(synk): GradientReversal backward (-lambda * grad) and Dropout train-mode
# masking are not represented; forward-pass (eval) behavior only. Softmax uses
# pl.reciprocal(approx=True), so rows sum to 1 only to ~1e-3.
if __name__ == "__main__":
    key = jax.random.PRNGKey(0)
    kx, kp = jax.random.split(key)

    B = 8
    x = jax.random.normal(kx, (B, D_IN), jnp.float32)
    params = init_params(kp)
    packed = pack_params(params)     # one-time packing (not in the per-call path)

    out, fea = jax.block_until_ready(classifier_forward(x, packed))
    ref_out, ref_fea = reference_forward(x, params)
    assert out.shape == (B, D_OUT) and fea.shape == (B, D_H1)
    # bf16 MXU inputs / bf16 slab + approx reciprocal -> compare loosely to f32 ref.
    assert jnp.allclose(out.astype(jnp.float32), ref_out, atol=3e-2, rtol=3e-2)
    assert jnp.allclose(fea.astype(jnp.float32), ref_fea, atol=3e-2, rtol=3e-2)

    # Multi-tile grid + batch padding path (B=200 with tb=64 -> 4 grid steps).
    B2 = 200
    x2 = jax.random.normal(jax.random.PRNGKey(1), (B2, D_IN), jnp.float32)
    out2, fea2 = jax.block_until_ready(classifier_forward(x2, packed, tb=64))
    ref_out2, ref_fea2 = reference_forward(x2, params)
    assert out2.shape == (B2, D_OUT) and fea2.shape == (B2, D_H1)
    assert jnp.allclose(out2.astype(jnp.float32), ref_out2, atol=3e-2, rtol=3e-2)
    assert jnp.allclose(fea2.astype(jnp.float32), ref_fea2, atol=3e-2, rtol=3e-2)

    # Hot-path slab (no post-kernel slicing) also runs clean.
    slab = jax.block_until_ready(classifier_forward_padded(x2, packed, tb=64))
    assert slab.shape[1] == SLAB_W and slab.dtype == jnp.bfloat16

    print("KERNEL_OK")
</pallas_src>

<mosaic_0001>
module attributes {stable_mosaic.version = 11 : i64} {
  func.func @_classifier_kernel(%arg0: i32, %arg1: memref<16x32xf32, #tpu.memory_space<vmem>>, %arg2: memref<32x64xbf16, #tpu.memory_space<vmem>>, %arg3: memref<1x64xf32, #tpu.memory_space<vmem>>, %arg4: memref<64x32xbf16, #tpu.memory_space<vmem>>, %arg5: memref<1x32xf32, #tpu.memory_space<vmem>>, %arg6: memref<32x64xbf16, #tpu.memory_space<vmem>>, %arg7: memref<1x64xf32, #tpu.memory_space<vmem>>, %arg8: memref<16x128xbf16, #tpu.memory_space<vmem>>) attributes {dimension_semantics = [#tpu.dimension_semantics<parallel>], iteration_bounds = array<i64: 2>, scalar_prefetch = 0 : i64, scratch_operands = 0 : i64, tpu.core_type = #tpu.core_type<tc>, window_params = [{transform_indices = @transform_0, window_bounds = array<i64: 16, 32>}, {pipeline_mode = #tpu.pipeline_mode<synchronous>, transform_indices = @transform_1, window_bounds = array<i64: 32, 64>}, {pipeline_mode = #tpu.pipeline_mode<synchronous>, transform_indices = @transform_2, window_bounds = array<i64: 1, 64>}, {pipeline_mode = #tpu.pipeline_mode<synchronous>, transform_indices = @transform_3, window_bounds = array<i64: 64, 32>}, {pipeline_mode = #tpu.pipeline_mode<synchronous>, transform_indices = @transform_4, window_bounds = array<i64: 1, 32>}, {pipeline_mode = #tpu.pipeline_mode<synchronous>, transform_indices = @transform_5, window_bounds = array<i64: 32, 64>}, {pipeline_mode = #tpu.pipeline_mode<synchronous>, transform_indices = @transform_6, window_bounds = array<i64: 1, 64>}, {transform_indices = @transform_7, window_bounds = array<i64: 16, 128>}]} {
    %c0 = arith.constant 0 : index
    %c0_0 = arith.constant 0 : index
    %0 = vector.load %arg1[%c0, %c0_0] : memref<16x32xf32, #tpu.memory_space<vmem>>, vector<16x32xf32>
    %1 = arith.truncf %0 : vector<16x32xf32> to vector<16x32xbf16>
    %c0_1 = arith.constant 0 : index
    %c0_2 = arith.constant 0 : index
    %2 = vector.load %arg2[%c0_1, %c0_2] : memref<32x64xbf16, #tpu.memory_space<vmem>>, vector<32x64xbf16>
    %cst = arith.constant dense<0.000000e+00> : vector<16x64xf32>
    %3 = tpu.matmul %1, %2, %cst {dimension_numbers = #tpu.dot_dimension_numbers<[1], [0], [0], [1], [0, 0, 1, 1], [], []>} : vector<16x32xbf16>, vector<32x64xbf16>, vector<16x64xf32> -> vector<16x64xf32>
    %c0_3 = arith.constant 0 : index
    %c0_4 = arith.constant 0 : index
    %4 = vector.load %arg3[%c0_3, %c0_4] : memref<1x64xf32, #tpu.memory_space<vmem>>, vector<1x64xf32>
    %5 = vector.broadcast %4 : vector<1x64xf32> to vector<16x64xf32>
    %6 = arith.addf %3, %5 : vector<16x64xf32>
    %cst_5 = arith.constant 0.000000e+00 : f32
    %7 = vector.broadcast %cst_5 : f32 to vector<16x64xf32>
    %8 = arith.maximumf %6, %7 : vector<16x64xf32>
    %9 = arith.truncf %8 : vector<16x64xf32> to vector<16x64xbf16>
    %c0_6 = arith.constant 0 : index
    %c0_7 = arith.constant 0 : index
    %10 = vector.load %arg4[%c0_6, %c0_7] : memref<64x32xbf16, #tpu.memory_space<vmem>>, vector<64x32xbf16>
    %cst_8 = arith.constant dense<0.000000e+00> : vector<16x32xf32>
    %11 = tpu.matmul %9, %10, %cst_8 {dimension_numbers = #tpu.dot_dimension_numbers<[1], [0], [0], [1], [0, 0, 1, 1], [], []>} : vector<16x64xbf16>, vector<64x32xbf16>, vector<16x32xf32> -> vector<16x32xf32>
    %c0_9 = arith.constant 0 : index
    %c0_10 = arith.constant 0 : index
    %12 = vector.load %arg5[%c0_9, %c0_10] : memref<1x32xf32, #tpu.memory_space<vmem>>, vector<1x32xf32>
    %13 = vector.broadcast %12 : vector<1x32xf32> to vector<16x32xf32>
    %14 = arith.addf %11, %13 : vector<16x32xf32>
    %cst_11 = arith.constant 0.000000e+00 : f32
    %15 = vector.broadcast %cst_11 : f32 to vector<16x32xf32>
    %16 = arith.maximumf %14, %15 : vector<16x32xf32>
    %17 = arith.truncf %16 : vector<16x32xf32> to vector<16x32xbf16>
    %c0_12 = arith.constant 0 : index
    %c0_13 = arith.constant 0 : index
    %18 = vector.load %arg6[%c0_12, %c0_13] : memref<32x64xbf16, #tpu.memory_space<vmem>>, vector<32x64xbf16>
    %cst_14 = arith.constant dense<0.000000e+00> : vector<16x64xf32>
    %19 = tpu.matmul %17, %18, %cst_14 {dimension_numbers = #tpu.dot_dimension_numbers<[1], [0], [0], [1], [0, 0, 1, 1], [], []>} : vector<16x32xbf16>, vector<32x64xbf16>, vector<16x64xf32> -> vector<16x64xf32>
    %c0_15 = arith.constant 0 : index
    %c0_16 = arith.constant 0 : index
    %20 = vector.load %arg7[%c0_15, %c0_16] : memref<1x64xf32, #tpu.memory_space<vmem>>, vector<1x64xf32>
    %21 = vector.broadcast %20 : vector<1x64xf32> to vector<16x64xf32>
    %22 = arith.addf %19, %21 : vector<16x64xf32>
    %cst_17 = arith.constant dense<0xFF800000> : vector<16xf32>
    %23 = vector.multi_reduction <maximumf>, %22, %cst_17 [1] : vector<16x64xf32> to vector<16xf32>
    %24 = vector.shape_cast %23 : vector<16xf32> to vector<16x1xf32>
    %25 = vector.broadcast %24 : vector<16x1xf32> to vector<16x64xf32>
    %26 = arith.subf %22, %25 : vector<16x64xf32>
    %27 = math.exp %26 : vector<16x64xf32>
    %cst_18 = arith.constant dense<0.000000e+00> : vector<16xf32>
    %28 = vector.multi_reduction <add>, %27, %cst_18 [1] : vector<16x64xf32> to vector<16xf32>
    %29 = vector.shape_cast %28 : vector<16xf32> to vector<16x1xf32>
    %30 = tpu.reciprocal %29 {approx = true} : vector<16x1xf32> -> vector<16x1xf32>
    %31 = vector.broadcast %30 : vector<16x1xf32> to vector<16x64xf32>
    %32 = arith.mulf %27, %31 : vector<16x64xf32>
    %33 = tpu.concatenate %6, %32 in 1 : vector<16x64xf32>, vector<16x64xf32> -> vector<16x128xf32>
    %34 = arith.truncf %33 : vector<16x128xf32> to vector<16x128xbf16>
    %c0_19 = arith.constant 0 : index
    %c0_20 = arith.constant 0 : index
    %35 = vector.load %arg8[%c0_19, %c0_20] : memref<16x128xbf16, #tpu.memory_space<vmem>>, vector<16x128xbf16>
    tpu.vector_store %arg8[%c0_19, %c0_20], %34 {strides = array<i32>} : memref<16x128xbf16, #tpu.memory_space<vmem>>, vector<16x128xbf16>,
    return
  }
  func.func @transform_0(%arg0: i32) -> (i32, i32) {
    %c0_i32 = arith.constant 0 : i32
    %c0_i32_0 = arith.constant 0 : i32
    return %arg0, %c0_i32 : i32, i32
  }
  func.func @transform_1(%arg0: i32) -> (i32, i32) {
    %c0_i32 = arith.constant 0 : i32
    %c0_i32_0 = arith.constant 0 : i32
    %c0_i32_1 = arith.constant 0 : i32
    return %c0_i32, %c0_i32_0 : i32, i32
  }
  func.func @transform_2(%arg0: i32) -> (i32, i32) {
    %c0_i32 = arith.constant 0 : i32
    %c0_i32_0 = arith.constant 0 : i32
    %c0_i32_1 = arith.constant 0 : i32
    return %c0_i32, %c0_i32_0 : i32, i32
  }
  func.func @transform_3(%arg0: i32) -> (i32, i32) {
    %c0_i32 = arith.constant 0 : i32
    %c0_i32_0 = arith.constant 0 : i32
    %c0_i32_1 = arith.constant 0 : i32
    return %c0_i32, %c0_i32_0 : i32, i32
  }
  func.func @transform_4(%arg0: i32) -> (i32, i32) {
    %c0_i32 = arith.constant 0 : i32
    %c0_i32_0 = arith.constant 0 : i32
    %c0_i32_1 = arith.constant 0 : i32
    return %c0_i32, %c0_i32_0 : i32, i32
  }
  func.func @transform_5(%arg0: i32) -> (i32, i32) {
    %c0_i32 = arith.constant 0 : i32
    %c0_i32_0 = arith.constant 0 : i32
    %c0_i32_1 = arith.constant 0 : i32
    return %c0_i32, %c0_i32_0 : i32, i32
  }
  func.func @transform_6(%arg0: i32) -> (i32, i32) {
    %c0_i32 = arith.constant 0 : i32
    %c0_i32_0 = arith.constant 0 : i32
    %c0_i32_1 = arith.constant 0 : i32
    return %c0_i32, %c0_i32_0 : i32, i32
  }
  func.func @transform_7(%arg0: i32) -> (i32, i32) {
    %c0_i32 = arith.constant 0 : i32
    %c0_i32_0 = arith.constant 0 : i32
    return %arg0, %c0_i32 : i32, i32
  }
}

</mosaic_0001>

<bundles_post_ra>
// kernel: classifier_forward_padded.1
= control target key start
LH: loop header
LB: loop body
LE: loop exit
PB: predicated region body
PF: predicated region fallthrough
CT: control target
= control target key end

     0   :  { %12 = vsyncpa [#allocation3], 0  ;;  %s1033_s0 = inlined_call_operand.vmem [shape: f32[32,32], index: 0, kind: input, shape index: {}]   ;;  %s1034_s1 = inlined_call_operand.vmem [shape: bf16[32,64], index: 1, kind: input, shape index: {}]   ;;  %s1035_s2 = inlined_call_operand.vmem [shape: f32[1,64], index: 2, kind: input, shape index: {}]   ;;  %s1036_s3 = inlined_call_operand.vmem [shape: bf16[64,32], index: 3, kind: input, shape index: {}]   ;;  %s1037_s4 = inlined_call_operand.vmem [shape: f32[1,32], index: 4, kind: input, shape index: {}]   ;;  %s1038_s5 = inlined_call_operand.vmem [shape: bf16[32,64], index: 5, kind: input, shape index: {}]   ;;  %s1039_s6 = inlined_call_operand.vmem [shape: f32[1,64], index: 6, kind: input, shape index: {}]   ;;  %s1040_s7 = inlined_call_operand.hbm [shape: bf16[32,128], index: 7, kind: output, shape index: {}]  }
   0x1   :  { %14 = vsyncpa [#allocation3 + $0x1], 0  ;;  %s875_s24 = smov 0   ;;  %s877_s25 = smov 0  }
   0x2   :  { %s879_s26 = smov 0   ;;  %s881_s27 = smov 0  }
   0x3 LB: > { %s896_s28 = sadd.s32 4294967295, %s828_s27   ;;  %s627_s29 = sadd.s32 4294967294, %s828_s27   ;;  %s828_s27 = sphi %s881_s27, %s1046_s27   ;;  %s824_s26 = sphi %s879_s26, %s1045_s26   ;;  %s820_s25 = sphi %s877_s25, %s1044_s25   ;;  %s816_s24 = sphi %s875_s24, %s1043_s24  }
   0x4   : > { %s900_s30 = sadd.s32 1, %s828_s27   ;;  %s179_s8 = sadd.s32 1, %s824_s26 }
   0x5   : > { %s176_s9 = ssub.s32 %s828_s27, %s900_s30  ;;  %p189_p0 = scmp.ne.s32.totalorder %s824_s26, %s820_s25 }
   0x6   : > { %p177_p1 = scmp.eq.s32.totalorder %s176_s9, 0  ;;  %p190_p2 = scmp.eq.s32.totalorder %s896_s28, 1 }
   0x7   : > { %p195_p3 = scmp.ne.s32.totalorder %s820_s25, %s816_s24  ;;  %p196_p4 = scmp.eq.s32.totalorder %s627_s29, 1 }
   0x8   : > { %s911_s10 = scalar_select %p177_p1, %s824_s26, %s179_s8  }
   0x9   : > { %p913_p5 = por %p190_p2, %p189_p0  ;;  %p917_p6 = por %p196_p4, %p195_p3 }
   0xa   : > { %p630_p7 = scmp.ge.s32.totalorder %s828_s27, 1  ;;  %p241_p8 = scmp.lt.s32.totalorder %s828_s27, 3 }
   0xc   : > { %p242_p9 = pnand %p630_p7, %p241_p8 }
   0xd   : > { %v750_v0 = vld [vmem:[%s1034_s1] sm:$0xff] (!%p242_p9)   ;;  %v830_v1 = vmov (!%p242_p9), 0.0   ;;  %v751_v2 = vld [vmem:[%s1034_s1 + $0x8] sm:$0xff] (!%p242_p9)   ;;  %vm831_vm0 = vmmov (!%p242_p9), 0   ;;  %s632_s17 = sshll.u32 (!%p242_p9), %s896_s28, 1  ;;  %vm307_vm1 = vcmask (!%p242_p9), 261120  }
   0xe   : > { %245 = sbr.rel (%p242_p9) target bundleno = 1136 (0x470), region = 48  ;;  %674 = vmatprep.subr.bf16.mxu0 (!%p242_p9), %v830_v1  ;;  %682 = vmatprep.subr.bf16.mxu1 (!%p242_p9), %v830_v1  ;;  %p274_p10 = scmp.lt.s32.totalorder (!%p242_p9), %s632_s17, 3  ;;  %v752_v3 = vld [vmem:[%s1036_s3] sm:$0xff] (!%p242_p9)   ;;  %v753_v4 = vld [vmem:[%s1036_s3 + $0x8] sm:$0xff] (!%p242_p9)   ;;  %v754_v8 = vld [vmem:[%s1036_s3 + $0x10] sm:$0xff] (!%p242_p9)   ;;  %vm394_vm2 = vcmask (!%p242_p9), 523264  }
   0xf   : > { %675 = vmatpush3.bf16.msra.mxu0 (!%p242_p9), %v750_v0  ;;  %678 = vmatprep.mubr.msk.bf16.mxu0 (!%p242_p9), %vm831_vm0, %v830_v1  ;;  %v755_v9 = vld [vmem:[%s1036_s3 + $0x18] sm:$0xff] (!%p242_p9)   ;;  %v634_v10 = vld [vmem:[%s1035_s2] ss:$0 sm:$0xff] (!%p242_p9)  ;;  %v757_v21 = vld [vmem:[%s1038_s5 + $0x8] sm:$0xff] (!%p242_p9)   ;;  %s832_s9 = smov (!%p242_p9), 64   ;;  %s270_s13 = sand.u32 (!%p242_p9), 1, %s820_s25  }
  0x10   : > { %676 = vmatprep.subr.bf16.mxu0 (!%p242_p9), %v830_v1  ;;  %690 = vmatprep.mubr.msk.bf16.mxu1 (!%p242_p9), %vm831_vm0, %v830_v1  ;;  %v756_v20 = vld [vmem:[%s1038_s5] sm:$0xff] (!%p242_p9)   ;;  %s631_s14 = sshll.u32 (!%p242_p9), %s270_s13, 3  ;;  %s657_s15 = sshll.u32 (!%p242_p9), %s896_s28, 7 }
  0x11   : > { %683 = vmatpush3.bf16.msra.mxu1 (!%p242_p9), %v752_v3  ;;  %v638_v22 = vld [vmem:[%s1037_s4] ss:$0 sm:$0xff] (!%p242_p9)  ;;  %s272_s16 = scalar_lea.vmem (!%p242_p9), [#allocation2], %s631_s14  ;;  %s986_s20 = scalar_lea.hbm (!%p242_p9), %s1040_s7, %s657_s15 }
  0x12   : > { %684 = vmatprep.subr.bf16.mxu1 (!%p242_p9), %v830_v1  ;;  %v644_v32 = vld [vmem:[%s1039_s6] ss:$0 sm:$0xff] (!%p242_p9)  ;;  %s990_s28 = scalar_lea.sflag (!%p242_p9), [#allocation3], %s270_s13 }
  0x13   : > { %677 = vmatpush3.bf16.msra.mxu0 (!%p242_p9), %v751_v2 }
  0x14   : > { %694 = vmatprep.subr.bf16.mxu0 (!%p242_p9), %v830_v1 }
  0x15   : > { %s1048_s17 = smov (!%p274_p10, %s632_s17), 3  ;;  %685 = vmatpush3.bf16.msra.mxu1 %v753_v4 }
  0x16   : > { %s633_s22 = sshll.u32 %s1048_s17, 3  ;;  %686 = vmatprep.subr.bf16.mxu1 %v830_v1  ;;  %s565_s17 = sshll.u32 %s272_s16, 4  ;;  %s988_s17 = int_to_ptr.vmem [resolvable:$true] %s565_s17 }
  0x17   : > { %s277_s8 = scalar_lea.vmem %s1033_s0, %s633_s22  ;;  %s766_s21 = scalar_lea.vmem %s988_s17, 128 }
  0x18   : > { %v281_v5 = vld [vmem:[%s277_s8] sm:$0xff]  ;;  %v282_v6 = vld [vmem:[%s277_s8 + $0x8] sm:$0xff]  ;;  %p767_p11 = scmp.ne.s32.totalorder %s988_s17, %s766_s21  ;;  %s833_s22 = smov [#allocation2]  }
  0x19   : > { %v283_v7 = vpack.c.bf16 %v282_v6, %v281_v5  ;;  %687 = vmatpush3.bf16.msra.mxu1 %v754_v8  ;;  %s770_s23 = sshll.u32 %s833_s22, 4  ;;  %s771_s23 = int_to_ptr.vmem [resolvable:$false] %s770_s23 }
  0x1a   : > { %688 = vmatprep.subr.bf16.mxu1 %v830_v1  ;;  %p768_p12 = pnand %p767_p11, %p913_p5  ;;  %s772_s29 = scalar_lea.vmem %s771_s23, 256 }
  0x1b   : > { %679 = vmatmul.mubr.msk.bf16.vlgmr.msra.gmra.mrb[0].mxu0 %vm307_vm1, %v283_v7  ;;  %p773_p0 = scmp.lt.s32.totalorder %s988_s17, %s771_s23  ;;  %p774_p1 = scmp.lt.s32.totalorder %s772_s29, %s766_s21 }
  0x1c   : > { %698 = vmatprep.mubr.msk.bf16.mxu0 %vm831_vm0, %v830_v1  ;;  %695 = vmatpush3.bf16.msra.mxu0 %v756_v20  ;;  %p769_p13 = pneg %p768_p12 }
  0x1d   : > { %689 = vmatpush3.bf16.msra.mxu1 %v755_v9  ;;  %696 = vmatprep.subr.bf16.mxu0 %v830_v1  ;;  %p775_p2 = por %p774_p1, %p773_p0 }
  0x1f   : > { %p776_p3 = pnand %p775_p2, %p769_p13 }
  0x20   : > { %697 = vmatpush3.bf16.msra.mxu0 %v757_v21 }
  0xee   : > { %v345_v11 = vpop.f32.mrb[0].mxu0 }
  0xef   : > { %v952_v12 = vadd.f32 %v634_v10, %v345_v11  ;;  %v680_v13 = vpop.f32.mrb[1].mxu0 }
  0xf0   : > { %v348_v14 = vpop.f32.mrb[2].mxu0 }
  0xf1   : > { %v954_v15 = vadd.f32 %v634_v10, %v348_v14  ;;  %v681_v16 = vpop.f32.mrb[3].mxu0  ;;  %v352_v17 = vmax.f32 %v952_v12, 0.0 }
  0xf3   : > { %v353_v18 = vmax.f32 %v954_v15, 0.0 }
  0xf5   : > { %v354_v19 = vpack.c.bf16 %v353_v18, %v352_v17 }
  0xf7   : > { %691 = vmatmul.mubr.msk.bf16.vlgmr.msra.gmra.mrb[0].mxu1 %vm394_vm2, %v354_v19 }
 0x1ca   : > { %v432_v23 = vpop.f32.mrb[0].mxu1 }
 0x1cb   : > { %v433_v24 = vadd.f32 %v638_v22, %v432_v23  ;;  %v692_v25 = vpop.f32.mrb[1].mxu1 }
 0x1cc   : > { %v435_v26 = vpop.f32.mrb[2].mxu1 }
 0x1cd   : > { %v436_v27 = vadd.f32 %v638_v22, %v435_v26  ;;  %v693_v28 = vpop.f32.mrb[3].mxu1  ;;  %v439_v29 = vmax.f32 %v433_v24, 0.0 }
 0x1cf   : > { %v440_v30 = vmax.f32 %v436_v27, 0.0 }
 0x1d1   : > { %v441_v31 = vpack.c.bf16 %v440_v30, %v439_v29 }
 0x1d3   : > { %699 = vmatmul.mubr.msk.bf16.vlgmr.msra.gmra.mrb[4].mxu0 %vm307_vm1, %v441_v31 }
 0x2a6   : > { %v502_v33 = vpop.f32.mrb[4].mxu0 }
 0x2a7   : > { %v503_v34 = vadd.f32 %v644_v32, %v502_v33  ;;  %v700_v35 = vpop.f32.mrb[5].mxu0 }
 0x2a8   : > { %v505_v36 = vpop.f32.mrb[6].mxu0 }
 0x2a9   : > { %v506_v37 = vadd.f32 %v644_v32, %v505_v36  ;;  %v701_v38 = vpop.f32.mrb[7].mxu0  ;;  %v509_v39 = vsel %vm394_vm2, %v503_v34, -inf }
 0x2aa   : > { %510 = vmax.xlane.f32.xlu0 %v509_v39 }
 0x2ab   : > { %v512_v40 = vsel %vm394_vm2, %v506_v37, -inf }
 0x2ae   : > { %513 = vmax.xlane.f32.xlu0 %v512_v40 }
 0x337   : > { %v511_v41 = vpop.xlane.xlu0 %510 }
 0x338   : > { %v515_v42 = vsub.f32 %v503_v34, %v511_v41 }
 0x33a   : > { %v517_v43 = vmul.f32 1.442695, %v515_v42 }
 0x33b   : > { %v514_v44 = vpop.xlane.xlu0 %513 }
 0x33c   : > { %758 = vpow2.f32 %v517_v43  ;;  %v516_v45 = vsub.f32 %v506_v37, %v514_v44 }
 0x33e   : > { %v519_v46 = vmul.f32 1.442695, %v516_v45 }
 0x340   : > { %760 = vpow2.f32 %v519_v46 }
 0x346   : > { %v759_v47 = vpop.eup %758 }
 0x347   : > { %v521_v48 = vsel %vm394_vm2, %v759_v47, 0.0 }
 0x348   : > { %522 = vadd.xlane.f32.xlu1 %v521_v48 }
 0x34a   : > { %v761_v49 = vpop.eup %760 }
 0x34b   : > { %v524_v50 = vsel %vm394_vm2, %v761_v49, 0.0 }
 0x34c   : > { %525 = vadd.xlane.f32.xlu1 %v524_v50 }
 0x3d5   : > { %v523_v51 = vpop.xlane.xlu1 %522 }
 0x3d6   : > { %762 = vrcp.f32 %v523_v51 }
 0x3d9   : > { %v526_v52 = vpop.xlane.xlu1 %525 }
 0x3da   : > { %764 = vrcp.f32 %v526_v52 }
 0x3e0   : > { %v763_v53 = vpop.eup %762 }
 0x3e1   : > { %v529_v55 = vmul.f32 %v763_v53, %v759_v47 }
 0x3e4   : > { %v765_v54 = vpop.eup %764 }
 0x3e5   : > { %v530_v56 = vmul.f32 %v765_v54, %v761_v49 }
 0x3e7   : > { %v745_v57 = vpack.i.bf16 %v530_v56, %v529_v55 }
 0x3e9   : > { %746 = vrot.lane.b32.xlu0 %v745_v57, %s832_s9 }
 0x45b   : > { %v747_v58 = vpop.permute.xlu0 %746 }
 0x45c   : > { %v749_v59 = vunpack.i.h.bf16 %v747_v58  ;;  %v748_v60 = vunpack.i.l.bf16 %v747_v58 }
 0x45e   : > { %v540_v61 = vsel %vm394_vm2, %v954_v15, %v749_v59  ;;  %v539_v62 = vsel %vm394_vm2, %v952_v12, %v748_v60 }
 0x45f   : > { %v661_v63 = vpack.c.bf16 %v540_v61, %v539_v62 }
 0x461   : > { %662 = vst [vmem:[%s272_s16] sm:$0xff] %v661_v63  }
 0x462   : > { %779 = shalt.err (!%p776_p3)
}
 0x463   : > { %s780_s8 = scalar_lea.hbm %s986_s20, 128  ;;  %s784_s15 = scalar_lea.hbm %s1040_s7, 256 }
 0x464   : > { %p781_p4 = scmp.ne.s32.totalorder %s986_s20, %s780_s8  ;;  %p785_p9 = scmp.lt.u32.totalorder %s986_s20, %s1040_s7 }
 0x465   : > { %p786_p10 = scmp.lt.u32.totalorder %s784_s15, %s780_s8  ;;  %p788_p12 = scmp.lt.u32.totalorder %s780_s8, %s986_s20 }
 0x466   : > { %p782_p7 = pnand %p781_p4, %p913_p5 }
 0x467   : > { %p787_p11 = por %p786_p10, %p785_p9 }
 0x468   : > { %p783_p8 = pneg %p782_p7 }
 0x469   : > { %p789_p13 = por %p788_p12, %p787_p11 }
 0x46b   : > { %p790_p0 = pnand %p789_p13, %p783_p8 }
 0x46d   : > { %793 = shalt.err (!%p790_p0)
}
 0x46e   : > { %s834_s19 = smov 4  }
 0x46f   : > { %702 = dma.vmem_to_hbm [thread:$0]  (%p913_p5), %s988_s17, 128, %s986_s20, %s990_s28, %s832_s9, %s832_s9, %s834_s19  }
 0x470 PF: > { %p708_p1 = scmp.ge.s32.totalorder %s828_s27, 2  ;;  %s580_s21 = sand.u32 1, %s816_s24  }
 0x471   : > { %s581_s22 = scalar_lea.sflag [#allocation3], %s580_s21 }
 0x472   : > { %p705_p2 = pnand %p708_p1, %p917_p6 }
 0x474   : > { %811 = dma.done.wait (!%p705_p2), %s581_s22, 128  }
 0x475   : > { %813 = vsyncadd (!%p705_p2), %s581_s22, 4294967168  ;;  %p17_p3 = scmp.ge.s32.totalorder %s900_s30, 4   ;;  %s1043_s24 = smov %s820_s25 }
 0x476   : > { %s1044_s25 = smov %s824_s26  ;;  %s1045_s26 = smov %s911_s10 }
 0x477   : > { %s1046_s27 = smov %s900_s30  ;;  %19 = sbr.rel (!%p17_p3) target bundleno = 3 (0x3), region = 83 }
 0x47e   :  { %586 = vsyncpa [#allocation3], 1 }
 0x47f   :  { %588 = vsyncpa [#allocation3 + $0x1], 1 }

</bundles_post_ra>
